<compile_context>
chip_gen: v5e
topology: v5e:2x2
jax: 0.10.0
libtpu: 0.0.40
codegen_flags: <defaults>
</compile_context>

<pallas_src>
import jax
import jax.numpy as jnp
from jax.experimental import pallas as pl
from jax.experimental.pallas import tpu as pltpu

SCALE_BOUND = 0.11        # scale_bound from __init__
LIKELIHOOD_BOUND = 1e-9   # likelihood_bound from __init__
_INV_SQRT2 = 0.7071067811865476
_LANES = 128


def _erfc_poly(t):
  """Shared Numerical Recipes polynomial in t = 1/(1 + z/2)."""
  return -1.26551223 + t * (1.00002368 + t * (0.37409196 + t * (0.09678418 +
         t * (-0.18628806 + t * (0.27886807 + t * (-1.13520398 + t * (1.48851587 +
         t * (-0.82215223 + t * 0.17087277))))))))


def _erfc(x):
  """erfc(x) for arbitrary sign; rel. error <= 1.2e-7 in float32."""
  z = jnp.abs(x)
  t = 1.0 / (1.0 + 0.5 * z)
  ans = t * jnp.exp(-z * z + _erfc_poly(t))
  return jnp.where(x >= 0.0, ans, 2.0 - ans)


def _erfc_nonneg(x):
  """erfc(x) specialized for x >= 0 (no abs / select / 2-ans path)."""
  t = 1.0 / (1.0 + 0.5 * x)
  return t * jnp.exp(-x * x + _erfc_poly(t))


def _gaussian_conditional_kernel(x_ref, scales_ref, means_ref, xout_ref, lik_ref):
  x = x_ref[...].astype(jnp.float32)
  m = means_ref[...].astype(jnp.float32)
  s = scales_ref[...].astype(jnp.float32)

  # quantize residual (clamp then round, matching torch op order)
  x_q = jnp.round(jnp.clip(x - m, -128.0, 127.0))
  x_out = x_q + m

  # values = |x_out - means| (same float op order as the torch code)
  v = jnp.abs(x_out - m)

  # LowerBound(scale_bound) forward == max(scales, bound)
  s = jnp.maximum(s, SCALE_BOUND)
  inv_s = 1.0 / s                 # one exact divide reused for both arguments

  # upper arg: -2^-0.5*(0.5 - v)/s == INV_SQRT2*(v - 0.5)/s   (any sign)
  # lower arg: -2^-0.5*(-0.5 - v)/s == INV_SQRT2*(v + 0.5)/s  (always >= 0)
  arg_u = _INV_SQRT2 * ((v - 0.5) * inv_s)
  arg_l = _INV_SQRT2 * ((v + 0.5) * inv_s)

  likelihood = 0.5 * (_erfc(arg_u) - _erfc_nonneg(arg_l))

  # LowerBound(likelihood_bound) forward == max(likelihood, bound)
  likelihood = jnp.maximum(likelihood, LIKELIHOOD_BOUND)

  xout_ref[...] = x_out
  lik_ref[...] = likelihood


def gaussian_conditional_forward(x, scales, means, *, target_tile_rows=1024):
  """Pallas implementation of GaussianConditional.forward (noise_func=None).

  x, scales, means: float arrays of identical shape (e.g. NCHW).
  Returns (x_out, likelihood), both with the input shape, float32.
  """
  orig_shape = x.shape
  total = x.size

  xf = x.reshape(-1).astype(jnp.float32)
  sf = scales.reshape(-1).astype(jnp.float32)
  mf = means.reshape(-1).astype(jnp.float32)

  # rows of 128 lanes; pick a big, sublane-aligned tile and pad up to it.
  rows = -(-total // _LANES)
  rows8 = ((rows + 7) // 8) * 8                 # multiple of 8 sublanes (f32)
  tile_rows = min(int(target_tile_rows), rows8)  # <= ~1024 rows: ~5 MiB VMEM
  padded_rows = -(-rows // tile_rows) * tile_rows
  padded_total = padded_rows * _LANES

  pad = padded_total - total
  if pad:
    xf = jnp.pad(xf, (0, pad))
    # pad scales with 1.0 so the padded region stays numerically benign
    sf = jnp.pad(sf, (0, pad), constant_values=1.0)
    mf = jnp.pad(mf, (0, pad))

  xf = xf.reshape(padded_rows, _LANES)
  sf = sf.reshape(padded_rows, _LANES)
  mf = mf.reshape(padded_rows, _LANES)

  blk = pl.BlockSpec((tile_rows, _LANES), lambda i: (i, 0))
  x_out_p, lik_p = pl.pallas_call(
      _gaussian_conditional_kernel,
      out_shape=(jax.ShapeDtypeStruct((padded_rows, _LANES), jnp.float32),
                 jax.ShapeDtypeStruct((padded_rows, _LANES), jnp.float32)),
      grid_spec=pl.GridSpec(
          grid=(padded_rows // tile_rows,),
          in_specs=[blk, blk, blk],
          out_specs=(blk, blk),
      ),
      compiler_params=pltpu.CompilerParams(
          dimension_semantics=("parallel",)),
  )(xf, sf, mf)

  x_out = x_out_p.reshape(-1)[:total].reshape(orig_shape)
  lik = lik_p.reshape(-1)[:total].reshape(orig_shape)
  return x_out, lik


def _reference_forward(x, scales, means):
  """Pure-JAX reference matching the torch module (for correctness check)."""
  x_out = jnp.round(jnp.clip(x - means, -128.0, 127.0)) + means
  v = jnp.abs(x_out - means)
  s = jnp.maximum(scales, SCALE_BOUND)
  upper = 0.5 * jax.scipy.special.erfc(-_INV_SQRT2 * ((0.5 - v) / s))
  lower = 0.5 * jax.scipy.special.erfc(-_INV_SQRT2 * ((-0.5 - v) / s))
  lik = jnp.maximum(upper - lower, LIKELIHOOD_BOUND)
  return x_out, lik


if __name__ == "__main__":
  key = jax.random.PRNGKey(0)
  kx, ks, km = jax.random.split(key, 3)

  B, C, H, W = 2, 4, 16, 16   # NCHW
  x = jax.random.normal(kx, (B, C, H, W), dtype=jnp.float32) * 4.0
  scales = jax.random.uniform(ks, (B, C, H, W), dtype=jnp.float32,
                              minval=0.05, maxval=2.0)
  means = jax.random.normal(km, (B, C, H, W), dtype=jnp.float32)

  x_out, likelihood = jax.jit(gaussian_conditional_forward)(x, scales, means)
  jax.block_until_ready((x_out, likelihood))

  assert x_out.shape == (B, C, H, W) and likelihood.shape == (B, C, H, W)
  assert bool(jnp.all(likelihood >= LIKELIHOOD_BOUND))

  # correctness vs. pure-JAX reference
  x_ref, lik_ref = _reference_forward(x, scales, means)
  assert bool(jnp.allclose(x_out, x_ref, atol=1e-6, rtol=1e-6))
  assert bool(jnp.allclose(likelihood, lik_ref, atol=1e-5, rtol=1e-4))

  print("KERNEL_OK")
</pallas_src>

<mosaic_0001>
module attributes {stable_mosaic.version = 11 : i64} {
  func.func @_gaussian_conditional_kernel(%arg0: i32, %arg1: memref<16x128xf32, #tpu.memory_space<vmem>>, %arg2: memref<16x128xf32, #tpu.memory_space<vmem>>, %arg3: memref<16x128xf32, #tpu.memory_space<vmem>>, %arg4: memref<16x128xf32, #tpu.memory_space<vmem>>, %arg5: memref<16x128xf32, #tpu.memory_space<vmem>>) attributes {dimension_semantics = [#tpu.dimension_semantics<parallel>], iteration_bounds = array<i64: 1>, scalar_prefetch = 0 : i64, scratch_operands = 0 : i64, tpu.core_type = #tpu.core_type<tc>, window_params = [{transform_indices = @transform_0, window_bounds = array<i64: 16, 128>}, {transform_indices = @transform_1, window_bounds = array<i64: 16, 128>}, {transform_indices = @transform_2, window_bounds = array<i64: 16, 128>}, {transform_indices = @transform_3, window_bounds = array<i64: 16, 128>}, {transform_indices = @transform_4, window_bounds = array<i64: 16, 128>}]} {
    %c0 = arith.constant 0 : index
    %c0_0 = arith.constant 0 : index
    %0 = vector.load %arg1[%c0, %c0_0] : memref<16x128xf32, #tpu.memory_space<vmem>>, vector<16x128xf32>
    %c0_1 = arith.constant 0 : index
    %c0_2 = arith.constant 0 : index
    %1 = vector.load %arg3[%c0_1, %c0_2] : memref<16x128xf32, #tpu.memory_space<vmem>>, vector<16x128xf32>
    %c0_3 = arith.constant 0 : index
    %c0_4 = arith.constant 0 : index
    %2 = vector.load %arg2[%c0_3, %c0_4] : memref<16x128xf32, #tpu.memory_space<vmem>>, vector<16x128xf32>
    %3 = arith.subf %0, %1 : vector<16x128xf32>
    %cst = arith.constant -1.280000e+02 : f32
    %cst_5 = arith.constant 1.270000e+02 : f32
    %4 = vector.broadcast %cst : f32 to vector<16x128xf32>
    %5 = arith.maximumf %4, %3 : vector<16x128xf32>
    %6 = vector.broadcast %cst_5 : f32 to vector<16x128xf32>
    %7 = arith.minimumf %6, %5 : vector<16x128xf32>
    %8 = math.roundeven %7 : vector<16x128xf32>
    %9 = arith.addf %8, %1 : vector<16x128xf32>
    %10 = arith.subf %9, %1 : vector<16x128xf32>
    %11 = math.absf %10 : vector<16x128xf32>
    %cst_6 = arith.constant 1.100000e-01 : f32
    %12 = vector.broadcast %cst_6 : f32 to vector<16x128xf32>
    %13 = arith.maximumf %2, %12 : vector<16x128xf32>
    %cst_7 = arith.constant 1.000000e+00 : f32
    %14 = vector.broadcast %cst_7 : f32 to vector<16x128xf32>
    %15 = arith.divf %14, %13 : vector<16x128xf32>
    %cst_8 = arith.constant 5.000000e-01 : f32
    %16 = vector.broadcast %cst_8 : f32 to vector<16x128xf32>
    %17 = arith.subf %11, %16 : vector<16x128xf32>
    %18 = arith.mulf %17, %15 : vector<16x128xf32>
    %cst_9 = arith.constant 0.707106769 : f32
    %19 = vector.broadcast %cst_9 : f32 to vector<16x128xf32>
    %20 = arith.mulf %19, %18 : vector<16x128xf32>
    %cst_10 = arith.constant 5.000000e-01 : f32
    %21 = vector.broadcast %cst_10 : f32 to vector<16x128xf32>
    %22 = arith.addf %11, %21 : vector<16x128xf32>
    %23 = arith.mulf %22, %15 : vector<16x128xf32>
    %cst_11 = arith.constant 0.707106769 : f32
    %24 = vector.broadcast %cst_11 : f32 to vector<16x128xf32>
    %25 = arith.mulf %24, %23 : vector<16x128xf32>
    %26 = math.absf %20 : vector<16x128xf32>
    %cst_12 = arith.constant 5.000000e-01 : f32
    %27 = vector.broadcast %cst_12 : f32 to vector<16x128xf32>
    %28 = arith.mulf %27, %26 : vector<16x128xf32>
    %cst_13 = arith.constant 1.000000e+00 : f32
    %29 = vector.broadcast %cst_13 : f32 to vector<16x128xf32>
    %30 = arith.addf %29, %28 : vector<16x128xf32>
    %cst_14 = arith.constant 1.000000e+00 : f32
    %31 = vector.broadcast %cst_14 : f32 to vector<16x128xf32>
    %32 = arith.divf %31, %30 : vector<16x128xf32>
    %cst_15 = arith.constant 0.000000e+00 : f32
    %33 = vector.broadcast %cst_15 : f32 to vector<16x128xf32>
    %34 = arith.subf %33, %26 : vector<16x128xf32>
    %35 = arith.mulf %34, %26 : vector<16x128xf32>
    %cst_16 = arith.constant 0.170872763 : f32
    %36 = vector.broadcast %cst_16 : f32 to vector<16x128xf32>
    %37 = arith.mulf %32, %36 : vector<16x128xf32>
    %cst_17 = arith.constant -0.822152256 : f32
    %38 = vector.broadcast %cst_17 : f32 to vector<16x128xf32>
    %39 = arith.addf %38, %37 : vector<16x128xf32>
    %40 = arith.mulf %32, %39 : vector<16x128xf32>
    %cst_18 = arith.constant 1.48851585 : f32
    %41 = vector.broadcast %cst_18 : f32 to vector<16x128xf32>
    %42 = arith.addf %41, %40 : vector<16x128xf32>
    %43 = arith.mulf %32, %42 : vector<16x128xf32>
    %cst_19 = arith.constant -1.13520396 : f32
    %44 = vector.broadcast %cst_19 : f32 to vector<16x128xf32>
    %45 = arith.addf %44, %43 : vector<16x128xf32>
    %46 = arith.mulf %32, %45 : vector<16x128xf32>
    %cst_20 = arith.constant 0.278868079 : f32
    %47 = vector.broadcast %cst_20 : f32 to vector<16x128xf32>
    %48 = arith.addf %47, %46 : vector<16x128xf32>
    %49 = arith.mulf %32, %48 : vector<16x128xf32>
    %cst_21 = arith.constant -0.186288059 : f32
    %50 = vector.broadcast %cst_21 : f32 to vector<16x128xf32>
    %51 = arith.addf %50, %49 : vector<16x128xf32>
    %52 = arith.mulf %32, %51 : vector<16x128xf32>
    %cst_22 = arith.constant 0.0967841818 : f32
    %53 = vector.broadcast %cst_22 : f32 to vector<16x128xf32>
    %54 = arith.addf %53, %52 : vector<16x128xf32>
    %55 = arith.mulf %32, %54 : vector<16x128xf32>
    %cst_23 = arith.constant 0.374091953 : f32
    %56 = vector.broadcast %cst_23 : f32 to vector<16x128xf32>
    %57 = arith.addf %56, %55 : vector<16x128xf32>
    %58 = arith.mulf %32, %57 : vector<16x128xf32>
    %cst_24 = arith.constant 1.00002372 : f32
    %59 = vector.broadcast %cst_24 : f32 to vector<16x128xf32>
    %60 = arith.addf %59, %58 : vector<16x128xf32>
    %61 = arith.mulf %32, %60 : vector<16x128xf32>
    %cst_25 = arith.constant -1.26551223 : f32
    %62 = vector.broadcast %cst_25 : f32 to vector<16x128xf32>
    %63 = arith.addf %62, %61 : vector<16x128xf32>
    %64 = arith.addf %35, %63 : vector<16x128xf32>
    %65 = math.exp %64 : vector<16x128xf32>
    %66 = arith.mulf %32, %65 : vector<16x128xf32>
    %cst_26 = arith.constant 0.000000e+00 : f32
    %67 = vector.broadcast %cst_26 : f32 to vector<16x128xf32>
    %68 = arith.cmpf oge, %20, %67 : vector<16x128xf32>
    %cst_27 = arith.constant 2.000000e+00 : f32
    %69 = vector.broadcast %cst_27 : f32 to vector<16x128xf32>
    %70 = arith.subf %69, %66 : vector<16x128xf32>
    %71 = arith.select %68, %66, %70 : vector<16x128xi1>, vector<16x128xf32>
    %cst_28 = arith.constant 5.000000e-01 : f32
    %72 = vector.broadcast %cst_28 : f32 to vector<16x128xf32>
    %73 = arith.mulf %72, %25 : vector<16x128xf32>
    %cst_29 = arith.constant 1.000000e+00 : f32
    %74 = vector.broadcast %cst_29 : f32 to vector<16x128xf32>
    %75 = arith.addf %74, %73 : vector<16x128xf32>
    %cst_30 = arith.constant 1.000000e+00 : f32
    %76 = vector.broadcast %cst_30 : f32 to vector<16x128xf32>
    %77 = arith.divf %76, %75 : vector<16x128xf32>
    %cst_31 = arith.constant 0.000000e+00 : f32
    %78 = vector.broadcast %cst_31 : f32 to vector<16x128xf32>
    %79 = arith.subf %78, %25 : vector<16x128xf32>
    %80 = arith.mulf %79, %25 : vector<16x128xf32>
    %cst_32 = arith.constant 0.170872763 : f32
    %81 = vector.broadcast %cst_32 : f32 to vector<16x128xf32>
    %82 = arith.mulf %77, %81 : vector<16x128xf32>
    %cst_33 = arith.constant -0.822152256 : f32
    %83 = vector.broadcast %cst_33 : f32 to vector<16x128xf32>
    %84 = arith.addf %83, %82 : vector<16x128xf32>
    %85 = arith.mulf %77, %84 : vector<16x128xf32>
    %cst_34 = arith.constant 1.48851585 : f32
    %86 = vector.broadcast %cst_34 : f32 to vector<16x128xf32>
    %87 = arith.addf %86, %85 : vector<16x128xf32>
    %88 = arith.mulf %77, %87 : vector<16x128xf32>
    %cst_35 = arith.constant -1.13520396 : f32
    %89 = vector.broadcast %cst_35 : f32 to vector<16x128xf32>
    %90 = arith.addf %89, %88 : vector<16x128xf32>
    %91 = arith.mulf %77, %90 : vector<16x128xf32>
    %cst_36 = arith.constant 0.278868079 : f32
    %92 = vector.broadcast %cst_36 : f32 to vector<16x128xf32>
    %93 = arith.addf %92, %91 : vector<16x128xf32>
    %94 = arith.mulf %77, %93 : vector<16x128xf32>
    %cst_37 = arith.constant -0.186288059 : f32
    %95 = vector.broadcast %cst_37 : f32 to vector<16x128xf32>
    %96 = arith.addf %95, %94 : vector<16x128xf32>
    %97 = arith.mulf %77, %96 : vector<16x128xf32>
    %cst_38 = arith.constant 0.0967841818 : f32
    %98 = vector.broadcast %cst_38 : f32 to vector<16x128xf32>
    %99 = arith.addf %98, %97 : vector<16x128xf32>
    %100 = arith.mulf %77, %99 : vector<16x128xf32>
    %cst_39 = arith.constant 0.374091953 : f32
    %101 = vector.broadcast %cst_39 : f32 to vector<16x128xf32>
    %102 = arith.addf %101, %100 : vector<16x128xf32>
    %103 = arith.mulf %77, %102 : vector<16x128xf32>
    %cst_40 = arith.constant 1.00002372 : f32
    %104 = vector.broadcast %cst_40 : f32 to vector<16x128xf32>
    %105 = arith.addf %104, %103 : vector<16x128xf32>
    %106 = arith.mulf %77, %105 : vector<16x128xf32>
    %cst_41 = arith.constant -1.26551223 : f32
    %107 = vector.broadcast %cst_41 : f32 to vector<16x128xf32>
    %108 = arith.addf %107, %106 : vector<16x128xf32>
    %109 = arith.addf %80, %108 : vector<16x128xf32>
    %110 = math.exp %109 : vector<16x128xf32>
    %111 = arith.mulf %77, %110 : vector<16x128xf32>
    %112 = arith.subf %71, %111 : vector<16x128xf32>
    %cst_42 = arith.constant 5.000000e-01 : f32
    %113 = vector.broadcast %cst_42 : f32 to vector<16x128xf32>
    %114 = arith.mulf %113, %112 : vector<16x128xf32>
    %cst_43 = arith.constant 9.99999971E-10 : f32
    %115 = vector.broadcast %cst_43 : f32 to vector<16x128xf32>
    %116 = arith.maximumf %114, %115 : vector<16x128xf32>
    %c0_44 = arith.constant 0 : index
    %c0_45 = arith.constant 0 : index
    %117 = vector.load %arg4[%c0_44, %c0_45] : memref<16x128xf32, #tpu.memory_space<vmem>>, vector<16x128xf32>
    tpu.vector_store %arg4[%c0_44, %c0_45], %9 {strides = array<i32>} : memref<16x128xf32, #tpu.memory_space<vmem>>, vector<16x128xf32>,
    %c0_46 = arith.constant 0 : index
    %c0_47 = arith.constant 0 : index
    %118 = vector.load %arg5[%c0_46, %c0_47] : memref<16x128xf32, #tpu.memory_space<vmem>>, vector<16x128xf32>
    tpu.vector_store %arg5[%c0_46, %c0_47], %116 {strides = array<i32>} : memref<16x128xf32, #tpu.memory_space<vmem>>, vector<16x128xf32>,
    return
  }
  func.func @transform_0(%arg0: i32) -> (i32, i32) {
    %c0_i32 = arith.constant 0 : i32
    %c0_i32_0 = arith.constant 0 : i32
    return %arg0, %c0_i32 : i32, i32
  }
  func.func @transform_1(%arg0: i32) -> (i32, i32) {
    %c0_i32 = arith.constant 0 : i32
    %c0_i32_0 = arith.constant 0 : i32
    return %arg0, %c0_i32 : i32, i32
  }
  func.func @transform_2(%arg0: i32) -> (i32, i32) {
    %c0_i32 = arith.constant 0 : i32
    %c0_i32_0 = arith.constant 0 : i32
    return %arg0, %c0_i32 : i32, i32
  }
  func.func @transform_3(%arg0: i32) -> (i32, i32) {
    %c0_i32 = arith.constant 0 : i32
    %c0_i32_0 = arith.constant 0 : i32
    return %arg0, %c0_i32 : i32, i32
  }
  func.func @transform_4(%arg0: i32) -> (i32, i32) {
    %c0_i32 = arith.constant 0 : i32
    %c0_i32_0 = arith.constant 0 : i32
    return %arg0, %c0_i32 : i32, i32
  }
}

</mosaic_0001>

<bundles_post_ra>
// kernel: gaussian_conditional_forward.1
= control target key start
LH: loop header
LB: loop body
LE: loop exit
PB: predicated region body
PF: predicated region fallthrough
CT: control target
= control target key end

     0   :  { %s487_s0 = inlined_call_operand.vmem [shape: f32[16,128], index: 0, kind: input, shape index: {}]   ;;  %s488_s1 = inlined_call_operand.vmem [shape: f32[16,128], index: 1, kind: input, shape index: {}]   ;;  %s489_s2 = inlined_call_operand.vmem [shape: f32[16,128], index: 2, kind: input, shape index: {}]   ;;  %s490_s3 = inlined_call_operand.vmem [shape: f32[16,128], index: 3, kind: output, shape index: {0}]   ;;  %s491_s4 = inlined_call_operand.vmem [shape: f32[16,128], index: 4, kind: output, shape index: {1}]  }
   0x1   :  { %v16_v0 = vld [vmem:[%s487_s0] sm:$0xff]  ;;  %v17_v1 = vld [vmem:[%s487_s0 + $0x8] sm:$0xff] }
   0x2   :  { %v18_v2 = vld [vmem:[%s489_s2] sm:$0xff]  ;;  %v345_v3 = vld [vmem:[%s489_s2 + $0x8] sm:$0xff] }
   0x3   :  { %v20_v4 = vld [vmem:[%s488_s1] sm:$0xff]  ;;  %v21_v5 = vld [vmem:[%s488_s1 + $0x8] sm:$0xff]  ;;  %v22_v6 = vsub.f32 %v16_v0, %v18_v2  ;;  %v23_v7 = vsub.f32 %v17_v1, %v345_v3 }
   0x4   :  { %v36_v8 = vmax.f32 %v20_v4, 0.11  ;;  %v37_v9 = vmax.f32 %v21_v5, 0.11 }
   0x5   :  { %v24_v10 = vmax.f32 %v22_v6, -128.0  ;;  %v25_v11 = vmax.f32 %v23_v7, -128.0 }
   0x6   :  { %288 = vrcp.f32 %v36_v8  ;;  %vm43_vm0 = vweird.f32 %v36_v8  ;;  %v47_v26 = vand.u32 2147483647, %v36_v8  ;;  %v49_v27 = vand.u32 2147483648, %v36_v8 }
   0x7   :  { %v26_v12 = vmin.f32 %v24_v10, 127.0  ;;  %290 = vrcp.f32 %v37_v9  ;;  %v27_v13 = vmin.f32 %v25_v11, 127.0  ;;  %vm58_vm2 = vweird.f32 %v37_v9 }
   0x8   :  { %v64_v35 = vand.u32 2147483648, %v37_v9  ;;  %v62_v38 = vand.u32 2147483647, %v37_v9  ;;  %v50_v45 = vor.u32 1.1754944e-38, %v49_v27  ;;  %vm48_vm8 = vcmp.eq.f32.partialorder %v47_v26, 8.507059e+37 }
   0x9   :  { %v274_v14 = vcvt.f32.s32 %v26_v12  ;;  %v272_v15 = vand.u32 2147483647, %v26_v12  ;;  %v282_v16 = vcvt.f32.s32 %v27_v13  ;;  %v277_v18 = vand.u32 2147483648, %v26_v12 }
   0xa   :  { %v280_v19 = vand.u32 2147483647, %v27_v13  ;;  %v285_v22 = vand.u32 2147483648, %v27_v13  ;;  %v65_v48 = vor.u32 1.1754944e-38, %v64_v35  ;;  %vm63_vm9 = vcmp.eq.f32.partialorder %v62_v38, 8.507059e+37 }
   0xb   :  { %v275_v17 = vcvt.s32.f32 %v274_v14  ;;  %v283_v21 = vcvt.s32.f32 %v282_v16  ;;  %vm354_vm1 = vcmp.lt.f32.partialorder %v272_v15, 8388608.0 }
   0xc   :  { %v289_v20 = vpop.eup %288  ;;  %vm281_vm3 = vcmp.lt.f32.partialorder %v280_v19, 8388608.0 }
   0xd   :  { %v291_v23 = vpop.eup %290  ;;  %v276_v24 = vand.u32 2147483647, %v275_v17  ;;  %v39_v25 = vmul.f32 %v289_v20, %v36_v8  ;;  %v284_v29 = vand.u32 2147483647, %v283_v21  ;;  %vm44_vm4 = vweird.f32 %v289_v20 }
   0xe   :  { %v54_v30 = vmul.f32 %v291_v23, %v37_v9  ;;  %vm59_vm5 = vweird.f32 %v291_v23  ;;  %vm361_vm6 = vmor %vm43_vm0, %vm44_vm4 }
   0xf   :  { %v278_v31 = vor.u32 %v277_v18, %v276_v24  ;;  %v40_v32 = vsub.f32 1.0, %v39_v25  ;;  %v286_v33 = vor.u32 %v285_v22, %v284_v29  ;;  %vm60_vm7 = vmor %vm58_vm2, %vm59_vm5 }
  0x10   :  { %v55_v34 = vsub.f32 1.0, %v54_v30 }
  0x11   :  { %v279_v36 = vsel %vm354_vm1, %v278_v31, %v26_v12  ;;  %v41_v37 = vmul.f32 %v289_v20, %v40_v32  ;;  %v287_v39 = vsel %vm281_vm3, %v286_v33, %v27_v13 }
  0x12   :  { %v30_v40 = vadd.f32 %v279_v36, %v18_v2  ;;  %v56_v42 = vmul.f32 %v291_v23, %v55_v34  ;;  %v31_v43 = vadd.f32 %v287_v39, %v345_v3 }
  0x13   :  { %v42_v44 = vadd.f32 %v289_v20, %v41_v37 }
  0x14   :  { %v32_v46 = vsub.f32 %v30_v40, %v18_v2  ;;  %v57_v47 = vadd.f32 %v291_v23, %v56_v42  ;;  %258 = vst [vmem:[%s490_s3] sm:$0xff] %v30_v40  ;;  %v33_v49 = vsub.f32 %v31_v43, %v345_v3 }
  0x15   :  { %v46_v50 = vsel %vm361_vm6, %v289_v20, %v42_v44  ;;  %259 = vst [vmem:[%s490_s3 + $0x8] sm:$0xff] %v31_v43 }
  0x16   :  { %v34_v51 = vand.u32 2147483647, %v32_v46  ;;  %v61_v52 = vsel %vm60_vm7, %v291_v23, %v57_v47  ;;  %v35_v53 = vand.u32 2147483647, %v33_v49  ;;  %v51_v54 = vsel %vm48_vm8, %v50_v45, %v46_v50 }
  0x17   :  { %v66_v55 = vsel %vm63_vm9, %v65_v48, %v61_v52 }
  0x18   :  { %v270_v56 = vadd.f32 -0.5, %v34_v51  ;;  %v74_v57 = vadd.f32 0.5, %v34_v51  ;;  %v271_v58 = vadd.f32 -0.5, %v35_v53  ;;  %v75_v59 = vadd.f32 0.5, %v35_v53 }
  0x1a   :  { %v70_v60 = vmul.f32 %v270_v56, %v51_v54  ;;  %v76_v61 = vmul.f32 %v74_v57, %v51_v54  ;;  %v71_v62 = vmul.f32 %v271_v58, %v66_v55  ;;  %v77_v63 = vmul.f32 %v75_v59, %v66_v55 }
  0x1c   :  { %v376_v0 = vmul.f32 0.70710677, %v70_v60  ;;  %v378_v1 = vmul.f32 0.70710677, %v76_v61  ;;  %v380_v2 = vmul.f32 0.70710677, %v71_v62 }
  0x1d   :  { %v382_v3 = vmul.f32 0.70710677, %v77_v63 }
  0x1e   :  { %v385_v4 = vand.u32 2147483647, %v376_v0  ;;  %v170_v5 = vmul.f32 0.5, %v378_v1  ;;  %v389_v6 = vand.u32 2147483647, %v380_v2 }
  0x1f   :  { %v171_v7 = vmul.f32 0.5, %v382_v3 }
  0x20   :  { %v82_v8 = vmul.f32 0.5, %v385_v4  ;;  %v172_v9 = vadd.f32 1.0, %v170_v5  ;;  %v83_v10 = vmul.f32 0.5, %v389_v6 }
  0x21   :  { %v173_v13 = vadd.f32 1.0, %v171_v7 }
  0x22   :  { %v84_v11 = vadd.f32 1.0, %v82_v8  ;;  %292 = vrcp.f32 %v172_v9  ;;  %v85_v12 = vadd.f32 1.0, %v83_v10  ;;  %v183_v17 = vand.u32 2147483647, %v172_v9 }
  0x23   :  { %vm179_vm11 = vweird.f32 %v172_v9  ;;  %v185_v20 = vand.u32 2147483648, %v172_v9  ;;  %vm194_vm2 = vweird.f32 %v173_v13  ;;  %v200_v38 = vand.u32 2147483648, %v173_v13 }
  0x24   :  { %294 = vrcp.f32 %v84_v11  ;;  %v97_v15 = vand.u32 2147483648, %v84_v11  ;;  %vm91_vm10 = vweird.f32 %v84_v11  ;;  %v95_v19 = vand.u32 2147483647, %v84_v11 }
  0x25   :  { %296 = vrcp.f32 %v85_v12  ;;  %vm106_vm12 = vweird.f32 %v85_v12  ;;  %v110_v26 = vand.u32 2147483647, %v85_v12  ;;  %v112_v27 = vand.u32 2147483648, %v85_v12 }
  0x26   :  { %298 = vrcp.f32 %v173_v13  ;;  %v98_v24 = vor.u32 1.1754944e-38, %v97_v15  ;;  %vm394_vm15 = vcmp.eq.f32.partialorder %v183_v17, 8.507059e+37  ;;  %v186_v34 = vor.u32 1.1754944e-38, %v185_v20 }
  0x27   :  { %v198_v42 = vand.u32 2147483647, %v173_v13  ;;  %vm96_vm5 = vcmp.eq.f32.partialorder %v95_v19, 8.507059e+37  ;;  %v113_v45 = vor.u32 1.1754944e-38, %v112_v27  ;;  %vm111_vm7 = vcmp.eq.f32.partialorder %v110_v26, 8.507059e+37 }
  0x28   :  { %v293_v14 = vpop.eup %292  ;;  %v201_v51 = vor.u32 1.1754944e-38, %v200_v38 }
  0x29   :  { %v175_v16 = vmul.f32 %v293_v14, %v172_v9  ;;  %vm180_vm13 = vweird.f32 %v293_v14  ;;  %vm199_vm9 = vcmp.eq.f32.partialorder %v198_v42, 8.507059e+37 }
  0x2a   :  { %v295_v18 = vpop.eup %294  ;;  %vm399_vm1 = vmor %vm179_vm11, %vm180_vm13  ;;  %vm165_vm11 = vcmp.ge.f32.partialorder %v380_v2, 0.0 }
  0x2b   :  { %v297_v21 = vpop.eup %296  ;;  %v87_v22 = vmul.f32 %v295_v18, %v84_v11  ;;  %v176_v23 = vsub.f32 1.0, %v175_v16  ;;  %vm92_vm14 = vweird.f32 %v295_v18 }
  0x2c   :  { %v102_v25 = vmul.f32 %v297_v21, %v85_v12  ;;  %v299_v28 = vpop.eup %298  ;;  %vm107_vm0 = vweird.f32 %v297_v21  ;;  %vm404_vm3 = vmor %vm91_vm10, %vm92_vm14  ;;  %vm164_vm10 = vcmp.ge.f32.partialorder %v376_v0, 0.0 }
  0x2d   :  { %v88_v29 = vsub.f32 1.0, %v87_v22  ;;  %v177_v30 = vmul.f32 %v293_v14, %v176_v23  ;;  %v190_v35 = vmul.f32 %v299_v28, %v173_v13  ;;  %vm195_vm4 = vweird.f32 %v299_v28  ;;  %vm410_vm6 = vmor %vm106_vm12, %vm107_vm0 }
  0x2e   :  { %v103_v32 = vsub.f32 1.0, %v102_v25  ;;  %vm196_vm8 = vmor %vm194_vm2, %vm195_vm4 }
  0x2f   :  { %v89_v36 = vmul.f32 %v295_v18, %v88_v29  ;;  %v178_v37 = vadd.f32 %v293_v14, %v177_v30  ;;  %v191_v41 = vsub.f32 1.0, %v190_v35 }
  0x30   :  { %v104_v40 = vmul.f32 %v297_v21, %v103_v32 }
  0x31   :  { %v90_v43 = vadd.f32 %v295_v18, %v89_v36  ;;  %v182_v46 = vsel %vm399_vm1, %v293_v14, %v178_v37  ;;  %v192_v49 = vmul.f32 %v299_v28, %v191_v41 }
  0x32   :  { %v105_v47 = vadd.f32 %v297_v21, %v104_v40  ;;  %v418_v48 = vsel %vm394_vm15, %v186_v34, %v182_v46 }
  0x33   :  { %v94_v50 = vsel %vm404_vm3, %v295_v18, %v90_v43  ;;  %v208_v52 = vmul.f32 0.17087276, %v418_v48  ;;  %v193_v55 = vadd.f32 %v299_v28, %v192_v49 }
  0x34   :  { %v424_v53 = vsel %vm96_vm5, %v98_v24, %v94_v50  ;;  %v109_v54 = vsel %vm410_vm6, %v297_v21, %v105_v47 }
  0x35   :  { %v428_v56 = vsel %vm111_vm7, %v113_v45, %v109_v54  ;;  %v120_v57 = vmul.f32 0.17087276, %v424_v53  ;;  %v210_v58 = vadd.f32 -0.82215226, %v208_v52  ;;  %v197_v60 = vsel %vm196_vm8, %v299_v28, %v193_v55 }
  0x36   :  { %v121_v59 = vmul.f32 0.17087276, %v428_v56  ;;  %v432_v62 = vsel %vm199_vm9, %v201_v51, %v197_v60  ;;  %v204_v55 = vsub.f32 0.0, %v378_v1  ;;  %v116_v60 = vsub.f32 0.0, %v385_v4 }
  0x37   :  { %v122_v61 = vadd.f32 -0.82215226, %v120_v57  ;;  %v212_v63 = vmul.f32 %v210_v58, %v418_v48  ;;  %v209_v7 = vmul.f32 0.17087276, %v432_v62 }
  0x38   :  { %v123_v5 = vadd.f32 -0.82215226, %v121_v59 }
  0x39   :  { %v124_v8 = vmul.f32 %v122_v61, %v424_v53  ;;  %v214_v9 = vadd.f32 1.4885159, %v212_v63  ;;  %v211_v11 = vadd.f32 -0.82215226, %v209_v7 }
  0x3a   :  { %v125_v10 = vmul.f32 %v123_v5, %v428_v56  ;;  %v117_v5 = vsub.f32 0.0, %v389_v6 }
  0x3b   :  { %v126_v12 = vadd.f32 1.4885159, %v124_v8  ;;  %v216_v13 = vmul.f32 %v214_v9, %v418_v48  ;;  %v213_v15 = vmul.f32 %v211_v11, %v432_v62 }
  0x3c   :  { %v127_v14 = vadd.f32 1.4885159, %v125_v10  ;;  %v206_v10 = vmul.f32 %v204_v55, %v378_v1 }
  0x3d   :  { %v128_v16 = vmul.f32 %v126_v12, %v424_v53  ;;  %v218_v17 = vadd.f32 -1.135204, %v216_v13  ;;  %v215_v19 = vadd.f32 1.4885159, %v213_v15  ;;  %v205_v13 = vsub.f32 0.0, %v382_v3 }
  0x3e   :  { %v129_v18 = vmul.f32 %v127_v14, %v428_v56  ;;  %v118_v15 = vmul.f32 %v116_v60, %v385_v4 }
  0x3f   :  { %v130_v20 = vadd.f32 -1.135204, %v128_v16  ;;  %v220_v21 = vmul.f32 %v218_v17, %v418_v48  ;;  %v217_v23 = vmul.f32 %v215_v19, %v432_v62 }
  0x40   :  { %v131_v22 = vadd.f32 -1.135204, %v129_v18  ;;  %v119_v18 = vmul.f32 %v117_v5, %v389_v6 }
  0x41   :  { %v132_v24 = vmul.f32 %v130_v20, %v424_v53  ;;  %v222_v25 = vadd.f32 0.27886808, %v220_v21  ;;  %v219_v27 = vadd.f32 -1.135204, %v217_v23  ;;  %v207_v23 = vmul.f32 %v205_v13, %v382_v3 }
  0x42   :  { %v133_v26 = vmul.f32 %v131_v22, %v428_v56 }
  0x43   :  { %v134_v28 = vadd.f32 0.27886808, %v132_v24  ;;  %v224_v29 = vmul.f32 %v222_v25, %v418_v48  ;;  %v221_v31 = vmul.f32 %v219_v27, %v432_v62 }
  0x44   :  { %v135_v30 = vadd.f32 0.27886808, %v133_v26 }
  0x45   :  { %v136_v32 = vmul.f32 %v134_v28, %v424_v53  ;;  %v226_v33 = vadd.f32 -0.18628806, %v224_v29  ;;  %v223_v35 = vadd.f32 0.27886808, %v221_v31 }
  0x46   :  { %v137_v34 = vmul.f32 %v135_v30, %v428_v56 }
  0x47   :  { %v138_v36 = vadd.f32 -0.18628806, %v136_v32  ;;  %v228_v37 = vmul.f32 %v226_v33, %v418_v48  ;;  %v225_v39 = vmul.f32 %v223_v35, %v432_v62 }
  0x48   :  { %v139_v38 = vadd.f32 -0.18628806, %v137_v34 }
  0x49   :  { %v140_v40 = vmul.f32 %v138_v36, %v424_v53  ;;  %v230_v41 = vadd.f32 0.09678418, %v228_v37  ;;  %v227_v43 = vadd.f32 -0.18628806, %v225_v39 }
  0x4a   :  { %v141_v42 = vmul.f32 %v139_v38, %v428_v56 }
  0x4b   :  { %v142_v44 = vadd.f32 0.09678418, %v140_v40  ;;  %v232_v45 = vmul.f32 %v230_v41, %v418_v48  ;;  %v229_v47 = vmul.f32 %v227_v43, %v432_v62 }
  0x4c   :  { %v143_v46 = vadd.f32 0.09678418, %v141_v42 }
  0x4d   :  { %v144_v49 = vmul.f32 %v142_v44, %v424_v53  ;;  %v234_v50 = vadd.f32 0.37409195, %v232_v45  ;;  %v231_v52 = vadd.f32 0.09678418, %v229_v47 }
  0x4e   :  { %v145_v51 = vmul.f32 %v143_v46, %v428_v56 }
  0x4f   :  { %v146_v54 = vadd.f32 0.37409195, %v144_v49  ;;  %v236_v57 = vmul.f32 %v234_v50, %v418_v48  ;;  %v233_v59 = vmul.f32 %v231_v52, %v432_v62 }
  0x50   :  { %v147_v58 = vadd.f32 0.37409195, %v145_v51 }
  0x51   :  { %v148_v61 = vmul.f32 %v146_v54, %v424_v53  ;;  %v238_v63 = vadd.f32 1.0000237, %v236_v57  ;;  %v235_v8 = vadd.f32 0.37409195, %v233_v59 }
  0x52   :  { %v149_v7 = vmul.f32 %v147_v58, %v428_v56 }
  0x53   :  { %v150_v9 = vadd.f32 1.0000237, %v148_v61  ;;  %v240_v11 = vmul.f32 %v238_v63, %v418_v48  ;;  %v237_v14 = vmul.f32 %v235_v8, %v432_v62 }
  0x54   :  { %v151_v12 = vadd.f32 1.0000237, %v149_v7 }
  0x55   :  { %v152_v16 = vmul.f32 %v150_v9, %v424_v53  ;;  %v242_v17 = vadd.f32 -1.2655122, %v240_v11  ;;  %v239_v20 = vadd.f32 1.0000237, %v237_v14 }
  0x56   :  { %v153_v19 = vmul.f32 %v151_v12, %v428_v56 }
  0x57   :  { %v154_v21 = vadd.f32 -1.2655122, %v152_v16  ;;  %v244_v22 = vadd.f32 %v242_v17, %v206_v10  ;;  %v241_v24 = vmul.f32 %v239_v20, %v432_v62 }
  0x58   :  { %v155_v1 = vadd.f32 -1.2655122, %v153_v19 }
  0x59   :  { %v156_v25 = vadd.f32 %v154_v21, %v118_v15  ;;  %v246_v26 = vmul.f32 1.442695, %v244_v22  ;;  %v243_v28 = vadd.f32 -1.2655122, %v241_v24 }
  0x5a   :  { %v157_v27 = vadd.f32 %v155_v1, %v119_v18 }
  0x5b   :  { %v158_v4 = vmul.f32 1.442695, %v156_v25  ;;  %v245_v30 = vadd.f32 %v243_v28, %v207_v23  ;;  %300 = vpow2.f32 %v246_v26 }
  0x5c   :  { %v160_v29 = vmul.f32 1.442695, %v157_v27 }
  0x5d   :  { %302 = vpow2.f32 %v158_v4  ;;  %v248_v6 = vmul.f32 1.442695, %v245_v30 }
  0x5e   :  { %304 = vpow2.f32 %v160_v29 }
  0x5f   :  { %306 = vpow2.f32 %v248_v6 }
  0x61   :  { %v301_v31 = vpop.eup %300 }
  0x62   :  { %v250_v35 = vmul.f32 %v301_v31, %v418_v48 }
  0x63   :  { %v303_v32 = vpop.eup %302 }
  0x64   :  { %v305_v33 = vpop.eup %304  ;;  %v162_v34 = vmul.f32 %v303_v32, %v424_v53 }
  0x65   :  { %v163_v3 = vmul.f32 %v305_v33, %v428_v56  ;;  %v307_v36 = vpop.eup %306 }
  0x66   :  { %v166_v37 = vsub.f32 2.0, %v162_v34  ;;  %v251_v39 = vmul.f32 %v307_v36, %v432_v62 }
  0x67   :  { %v167_v38 = vsub.f32 2.0, %v163_v3 }
  0x68   :  { %v168_v40 = vsel %vm164_vm10, %v162_v34, %v166_v37 }
  0x69   :  { %v169_v41 = vsel %vm165_vm11, %v163_v3, %v167_v38  ;;  %v252_v42 = vsub.f32 %v168_v40, %v250_v35 }
  0x6a   :  { %v253_v43 = vsub.f32 %v169_v41, %v251_v39 }
  0x6b   :  { %v254_v44 = vmul.f32 0.5, %v252_v42 }
  0x6c   :  { %v255_v45 = vmul.f32 0.5, %v253_v43 }
  0x6d   :  { %v256_v53 = vmax.f32 %v254_v44, 1e-09 }
  0x6e   :  { %v257_v46 = vmax.f32 %v255_v45, 1e-09 }
  0x6f   :  { %260 = vst [vmem:[%s491_s4] sm:$0xff] %v256_v53 }
  0x70   :  { %261 = vst [vmem:[%s491_s4 + $0x8] sm:$0xff] %v257_v46 }

</bundles_post_ra>
